<compile_context>
chip_gen: v5e
topology: v5e:2x2
jax: 0.10.0
libtpu: 0.0.40
codegen_flags: <defaults>
</compile_context>

<pallas_src>
import jax
import jax.numpy as jnp
from jax import lax
from jax.experimental import pallas as pl
from jax.experimental.pallas import tpu as pltpu

EPSILON = 2.220446049250313e-16   # np.finfo(float).eps
CD_TEMP = 0.1                     # ConcreteDropout temperature (1/10)
BN_EPS = 1e-5                     # nn.BatchNorm1d default eps

# Row indices inside the packed (12, MAXF) parameter slab.
(PK_A1S, PK_A1D, PK_B1, PK_BNG, PK_BNB, PK_BNM, PK_BNV,
 PK_A2S, PK_A2D, PK_B2, PK_LOGP, PK_EMBW) = range(12)
PK_ROWS = 12


def _vspec():
    return pl.BlockSpec(memory_space=pltpu.MemorySpace.VMEM)


def _sspec():
    return pl.BlockSpec(memory_space=pltpu.MemorySpace.SMEM)


# ---------------------------------------------------------------------------
# Fused forward kernel.
# ---------------------------------------------------------------------------
def _fused_forward_kernel(x_ref, adj_ref, ym_ref, w1_ref, w2_ref, pk_ref,
                          norm_ref, graph_ref, loss_ref):
    in_c, hid_c = w1_ref.shape
    out_c = w2_ref.shape[1]

    x = x_ref[...]                                                # (N, in_c)
    adj = adj_ref[...]                                            # (N, N)
    # Hoisted edge mask: adj>0 -> 0, else big negative (pre-softmax bias).
    mask_bias = jnp.where(adj > 0, 0.0, -1e30)                    # (N, N)

    def row(idx, width):
        # Static slice of the packed parameter slab -> (1, width) load.
        return pk_ref[idx:idx + 1, 0:width]

    # -------- GAT layer (heads=1, concat=False), dense adjacency ----------
    #   x_proj = x @ W
    #   e[i,j] = leaky_relu(a_dst.x_proj[i] + a_src.x_proj[j], 0.2)
    #   att    = softmax_j(e masked by adj);  out = att @ x_proj + bias
    def gat(xin, w, a_src, a_dst, bias):
        xp = jnp.dot(xin, w, preferred_element_type=jnp.float32)            # (N, Fo)
        e_dst = jnp.sum(xp * a_dst, axis=1, keepdims=True)                  # (N, 1)
        # (1, N) source scores via contraction on the feature (lane) dim —
        # avoids a sublane->lane transpose.
        e_src = jnp.einsum('of,nf->on', a_src, xp,
                           preferred_element_type=jnp.float32)              # (1, N)
        e = e_dst + e_src                                                   # (N, N)
        e = jnp.maximum(e, 0.2 * e)                                         # leaky_relu(0.2)
        logits = e + mask_bias
        m = jnp.max(logits, axis=1, keepdims=True)
        p = jnp.exp(logits - m)
        att = p / jnp.sum(p, axis=1, keepdims=True)        # exact divide (parity)
        return jnp.dot(att, xp, preferred_element_type=jnp.float32) + bias

    # -------- conv1 + BatchNorm1d(eval) + leaky_relu(0.01) ----------------
    hid = gat(x, w1_ref[...], row(PK_A1S, hid_c), row(PK_A1D, hid_c),
              row(PK_B1, hid_c))
    inv_std = lax.rsqrt(row(PK_BNV, hid_c) + BN_EPS)
    hid = (hid - row(PK_BNM, hid_c)) * inv_std * row(PK_BNG, hid_c) \
        + row(PK_BNB, hid_c)
    hid = jnp.maximum(hid, 0.01 * hid)

    # -------- conv2 + log_softmax(dim=1) -----------------------------------
    out = gat(hid, w2_ref[...], row(PK_A2S, out_c), row(PK_A2D, out_c),
              row(PK_B2, out_c))                                            # (N, C)
    m_o = jnp.max(out, axis=1, keepdims=True)
    s_o = out - m_o
    lse = jnp.log(jnp.sum(jnp.exp(s_o), axis=1, keepdims=True))
    logp = s_o - lse                                                        # (N, C)

    # node_p = out[:, 1].exp() computed in-kernel (no host round-trip)
    node_p = jnp.exp(logp[:, 1:2])                                          # (N, 1)

    # -------- NLL loss on masked rows --------------------------------------
    n = logp.shape[0]
    y_i = ym_ref[:, 0:1].astype(jnp.int32)                                  # (N, 1)
    mask = ym_ref[:, 1:2]                                                   # (N, 1)
    col = lax.broadcasted_iota(jnp.int32, (n, out_c), 1)
    onehot = (col == y_i).astype(jnp.float32)
    picked = jnp.sum(logp * onehot, axis=1, keepdims=True)                  # (N, 1)
    num = jnp.sum(picked * mask, axis=0, keepdims=True)                     # (1, 1)
    den = jnp.sum(mask, axis=0, keepdims=True)                              # (1, 1)
    # Matches torch semantics: an empty train_mask would yield nan (not guarded).
    nll = -(num / den)
    loss_ref[0, 0] = nll[0, 0]

    # -------- GeneralizationGraph (ConcreteDropout, eval mode) -------------
    lp = row(PK_LOGP, in_c)                                                 # (1, F)
    dropout_p = jax.nn.sigmoid(lp)
    unif = 0.5                                                              # eval noise
    approx = (jnp.log(dropout_p + EPSILON) - jnp.log(1.0 - dropout_p + EPSILON)
              + jnp.log(unif + EPSILON) - jnp.log(1.0 - unif + EPSILON))
    keep = 1.0 - jax.nn.sigmoid(approx / CD_TEMP)                           # (1, F)
    # TODO(synk): pw_vimp = 1 - dropout_p is returned by the original module but
    # the calling line `out1, graph = self.generalization(...)` unpacks a 3-tuple
    # into 2 names (would raise in PyTorch); we follow the evident intent and drop it.

    emb_w = jax.nn.sigmoid(row(PK_EMBW, in_c))                              # (1, F)
    expanded = x * keep * emb_w                                             # (N, F)

    # graph[i,j] = sum_f expanded[i,f]*expanded[j,f] / (sum_f expanded[j,f] + 1e-6)
    # Normalize the second operand's rows first (denom[j] is f-independent),
    # then a single MXU contraction -> identical result, one fewer matmul.
    denom = jnp.sum(expanded, axis=1, keepdims=True) + 1e-6                 # (N, 1)
    expanded_n = expanded / denom                                           # exact divide (parity)
    graph = jnp.einsum('if,jf->ij', expanded, expanded_n,
                       preferred_element_type=jnp.float32)                  # (N, N)
    graph_ref[...] = graph

    # Single fused matvec: graph @ [1-p, p] gives (nag, p) columns directly.
    p2 = jnp.concatenate([1.0 - node_p, node_p], axis=1)                    # (N, 2)
    adjp2 = jnp.dot(graph, p2, preferred_element_type=jnp.float32)          # (N, 2)

    # softmax over the two columns per row — single (N,2) store
    m2 = jnp.max(adjp2, axis=1, keepdims=True)
    e2 = jnp.exp(adjp2 - m2)
    inv_s = pl.reciprocal(jnp.sum(e2, axis=1, keepdims=True), approx=True)  # (N, 1)
    norm_ref[...] = e2 * inv_s                                              # (N, 2)


# ---------------------------------------------------------------------------
# Wrapper: one pallas_call for the whole forward.
# ---------------------------------------------------------------------------
def forward(x, adj, y, train_mask, params):
    n, in_c = x.shape
    hid_c = params['w1'].shape[1]
    out_c = params['w2'].shape[1]
    max_f = max(in_c, hid_c, out_c)

    # Pack y + train_mask into one (N, 2) input (one fewer input DMA).
    ym = jnp.concatenate([y.reshape(n, 1).astype(jnp.float32),
                          train_mask.reshape(n, 1).astype(jnp.float32)], axis=1)

    # Pack the 12 small (1, F) parameter rows into one (12, max_f) slab.
    def pad_row(v):
        v = v.reshape(1, -1).astype(jnp.float32)
        return jnp.pad(v, ((0, 0), (0, max_f - v.shape[1])))

    pk = jnp.concatenate([pad_row(params[k]) for k in (
        'a1_src', 'a1_dst', 'b1',
        'bn_gamma', 'bn_beta', 'bn_mean', 'bn_var',
        'a2_src', 'a2_dst', 'b2',
        'logit_p', 'emb_w')], axis=0)                                       # (12, max_f)

    # Advisory cost hint (tiny kernel; launch/dispatch dominates).
    flops = 2 * n * (in_c * hid_c + n * hid_c + hid_c * out_c + n * out_c
                     + n * in_c + 2 * n) + 20 * n * n
    transcendentals = 3 * n * n + 10 * n
    bytes_accessed = 4 * (n * in_c + n * n + 2 * n + in_c * hid_c
                          + hid_c * out_c + PK_ROWS * max_f
                          + 2 * n + n * n + 1)

    norm, graph, loss = pl.pallas_call(
        _fused_forward_kernel,
        out_shape=(jax.ShapeDtypeStruct((n, 2), jnp.float32),
                   jax.ShapeDtypeStruct((n, n), jnp.float32),
                   jax.ShapeDtypeStruct((1, 1), jnp.float32)),
        in_specs=[_vspec()] * 6,
        out_specs=(_vspec(), _vspec(), _sspec()),
        cost_estimate=pl.CostEstimate(flops=flops,
                                      transcendentals=transcendentals,
                                      bytes_accessed=bytes_accessed),
    )(x, adj, ym, params['w1'], params['w2'], pk)
    return norm, loss[0, 0], graph


if __name__ == "__main__":
    N, IN_C, HID_C, OUT_C, E = 16, 8, 16, 4, 40

    key = jax.random.PRNGKey(0)
    ks = jax.random.split(key, 12)

    # data.x, data.edge_index (as dense adjacency), data.y, data.train_mask
    x = jax.random.normal(ks[0], (N, IN_C), jnp.float32)
    src = jax.random.randint(ks[1], (E,), 0, N)
    dst = jax.random.randint(ks[2], (E,), 0, N)
    adj = jnp.zeros((N, N), jnp.float32).at[dst, src].set(1.0)   # adj[i, j]=1  <=>  edge j->i
    adj = jnp.maximum(adj, jnp.eye(N, dtype=jnp.float32))        # GATConv add_self_loops=True
    y = jax.random.randint(ks[3], (N,), 0, OUT_C).astype(jnp.int32)
    train_mask = (jnp.arange(N) < N // 2).astype(jnp.float32)

    def glorot(k, shape):
        lim = (6.0 / (shape[0] + shape[1])) ** 0.5
        return jax.random.uniform(k, shape, jnp.float32, -lim, lim)

    params = dict(
        # GATConv 1: lin weight, att_src, att_dst, bias
        w1=glorot(ks[4], (IN_C, HID_C)),
        a1_src=0.1 * jax.random.normal(ks[5], (1, HID_C), jnp.float32),
        a1_dst=0.1 * jax.random.normal(ks[6], (1, HID_C), jnp.float32),
        b1=jnp.zeros((1, HID_C), jnp.float32),
        # BatchNorm1d(hid_c) default init + running stats
        bn_gamma=jnp.ones((1, HID_C), jnp.float32),
        bn_beta=jnp.zeros((1, HID_C), jnp.float32),
        bn_mean=jnp.zeros((1, HID_C), jnp.float32),
        bn_var=jnp.ones((1, HID_C), jnp.float32),
        # GATConv 2
        w2=glorot(ks[7], (HID_C, OUT_C)),
        a2_src=0.1 * jax.random.normal(ks[8], (1, OUT_C), jnp.float32),
        a2_dst=0.1 * jax.random.normal(ks[9], (1, OUT_C), jnp.float32),
        b2=jnp.zeros((1, OUT_C), jnp.float32),
        # GeneralizationGraph: ConcreteDropout.logit_p and embedding_w init to zeros
        logit_p=jnp.zeros((1, IN_C), jnp.float32),
        emb_w=jnp.zeros((1, IN_C), jnp.float32),
    )

    fwd = jax.jit(forward)
    out1, loss1, graph = fwd(x, adj, y, train_mask, params)
    jax.block_until_ready((out1, loss1, graph))
    assert out1.shape == (N, 2) and graph.shape == (N, N) and loss1.shape == ()
    assert bool(jnp.all(jnp.isfinite(out1))) and bool(jnp.isfinite(loss1))
    print("KERNEL_OK")
</pallas_src>

<mosaic_0001>
module attributes {stable_mosaic.version = 11 : i64} {
  func.func @_fused_forward_kernel(%arg0: memref<16x8xf32, #tpu.memory_space<vmem>>, %arg1: memref<16x16xf32, #tpu.memory_space<vmem>>, %arg2: memref<16x2xf32, #tpu.memory_space<vmem>>, %arg3: memref<8x16xf32, #tpu.memory_space<vmem>>, %arg4: memref<16x4xf32, #tpu.memory_space<vmem>>, %arg5: memref<12x16xf32, #tpu.memory_space<vmem>>, %arg6: memref<16x2xf32, #tpu.memory_space<vmem>>, %arg7: memref<16x16xf32, #tpu.memory_space<vmem>>, %arg8: memref<1x1xf32, #tpu.memory_space<smem>>) attributes {dimension_semantics = [], scalar_prefetch = 0 : i64, scratch_operands = 0 : i64, tpu.core_type = #tpu.core_type<tc>} {
    %c0 = arith.constant 0 : index
    %c0_0 = arith.constant 0 : index
    %0 = vector.load %arg0[%c0, %c0_0] : memref<16x8xf32, #tpu.memory_space<vmem>>, vector<16x8xf32>
    %c0_1 = arith.constant 0 : index
    %c0_2 = arith.constant 0 : index
    %1 = vector.load %arg1[%c0_1, %c0_2] : memref<16x16xf32, #tpu.memory_space<vmem>>, vector<16x16xf32>
    %cst = arith.constant 0.000000e+00 : f32
    %2 = vector.broadcast %cst : f32 to vector<16x16xf32>
    %3 = arith.cmpf ogt, %1, %2 : vector<16x16xf32>
    %cst_3 = arith.constant 0.000000e+00 : f32
    %cst_4 = arith.constant -1.000000e+30 : f32
    %4 = vector.broadcast %cst_3 : f32 to vector<16x16xf32>
    %5 = vector.broadcast %cst_4 : f32 to vector<16x16xf32>
    %6 = arith.select %3, %4, %5 : vector<16x16xi1>, vector<16x16xf32>
    %c0_5 = arith.constant 0 : index
    %c0_6 = arith.constant 0 : index
    %7 = vector.load %arg3[%c0_5, %c0_6] : memref<8x16xf32, #tpu.memory_space<vmem>>, vector<8x16xf32>
    %c0_7 = arith.constant 0 : index
    %c0_8 = arith.constant 0 : index
    %8 = vector.load %arg5[%c0_7, %c0_8] : memref<12x16xf32, #tpu.memory_space<vmem>>, vector<1x16xf32>
    %c1 = arith.constant 1 : index
    %c0_9 = arith.constant 0 : index
    %9 = vector.load %arg5[%c1, %c0_9] : memref<12x16xf32, #tpu.memory_space<vmem>>, vector<1x16xf32>
    %c2 = arith.constant 2 : index
    %c0_10 = arith.constant 0 : index
    %10 = vector.load %arg5[%c2, %c0_10] : memref<12x16xf32, #tpu.memory_space<vmem>>, vector<1x16xf32>
    %cst_11 = arith.constant dense<0.000000e+00> : vector<16x16xf32>
    %11 = tpu.matmul %0, %7, %cst_11 {dimension_numbers = #tpu.dot_dimension_numbers<[1], [0], [0], [1], [0, 0, 1, 1], [], []>} : vector<16x8xf32>, vector<8x16xf32>, vector<16x16xf32> -> vector<16x16xf32>
    %12 = vector.broadcast %9 : vector<1x16xf32> to vector<16x16xf32>
    %13 = arith.mulf %11, %12 : vector<16x16xf32>
    %cst_12 = arith.constant dense<0.000000e+00> : vector<16xf32>
    %14 = vector.multi_reduction <add>, %13, %cst_12 [1] : vector<16x16xf32> to vector<16xf32>
    %15 = vector.shape_cast %14 : vector<16xf32> to vector<16x1xf32>
    "tpu.trace_start"() <{level = 10 : i32, message = "of,nf->on"}> : () -> ()
    %cst_13 = arith.constant dense<0.000000e+00> : vector<1x16xf32>
    %16 = tpu.matmul %8, %11, %cst_13 {dimension_numbers = #tpu.dot_dimension_numbers<[1], [1], [0], [0], [0, 0, 1, 0], [], []>} : vector<1x16xf32>, vector<16x16xf32>, vector<1x16xf32> -> vector<1x16xf32>
    "tpu.trace_stop"() : () -> ()
    %17 = vector.broadcast %15 : vector<16x1xf32> to vector<16x16xf32>
    %18 = vector.broadcast %16 : vector<1x16xf32> to vector<16x16xf32>
    %19 = arith.addf %17, %18 : vector<16x16xf32>
    %cst_14 = arith.constant 2.000000e-01 : f32
    %20 = vector.broadcast %cst_14 : f32 to vector<16x16xf32>
    %21 = arith.mulf %20, %19 : vector<16x16xf32>
    %22 = arith.maximumf %19, %21 : vector<16x16xf32>
    %23 = arith.addf %22, %6 : vector<16x16xf32>
    %cst_15 = arith.constant dense<0xFF800000> : vector<16xf32>
    %24 = vector.multi_reduction <maximumf>, %23, %cst_15 [1] : vector<16x16xf32> to vector<16xf32>
    %25 = vector.shape_cast %24 : vector<16xf32> to vector<16x1xf32>
    %26 = vector.broadcast %25 : vector<16x1xf32> to vector<16x16xf32>
    %27 = arith.subf %23, %26 : vector<16x16xf32>
    %28 = math.exp %27 : vector<16x16xf32>
    %cst_16 = arith.constant dense<0.000000e+00> : vector<16xf32>
    %29 = vector.multi_reduction <add>, %28, %cst_16 [1] : vector<16x16xf32> to vector<16xf32>
    %30 = vector.shape_cast %29 : vector<16xf32> to vector<16x1xf32>
    %31 = vector.broadcast %30 : vector<16x1xf32> to vector<16x16xf32>
    %32 = arith.divf %28, %31 : vector<16x16xf32>
    %cst_17 = arith.constant dense<0.000000e+00> : vector<16x16xf32>
    %33 = tpu.matmul %32, %11, %cst_17 {dimension_numbers = #tpu.dot_dimension_numbers<[1], [0], [0], [1], [0, 0, 1, 1], [], []>} : vector<16x16xf32>, vector<16x16xf32>, vector<16x16xf32> -> vector<16x16xf32>
    %34 = vector.broadcast %10 : vector<1x16xf32> to vector<16x16xf32>
    %35 = arith.addf %33, %34 : vector<16x16xf32>
    %c6 = arith.constant 6 : index
    %c0_18 = arith.constant 0 : index
    %36 = vector.load %arg5[%c6, %c0_18] : memref<12x16xf32, #tpu.memory_space<vmem>>, vector<1x16xf32>
    %cst_19 = arith.constant 9.99999974E-6 : f32
    %37 = vector.broadcast %cst_19 : f32 to vector<1x16xf32>
    %38 = arith.addf %36, %37 : vector<1x16xf32>
    %39 = math.rsqrt %38 : vector<1x16xf32>
    %c5 = arith.constant 5 : index
    %c0_20 = arith.constant 0 : index
    %40 = vector.load %arg5[%c5, %c0_20] : memref<12x16xf32, #tpu.memory_space<vmem>>, vector<1x16xf32>
    %41 = vector.broadcast %40 : vector<1x16xf32> to vector<16x16xf32>
    %42 = arith.subf %35, %41 : vector<16x16xf32>
    %43 = vector.broadcast %39 : vector<1x16xf32> to vector<16x16xf32>
    %44 = arith.mulf %42, %43 : vector<16x16xf32>
    %c3 = arith.constant 3 : index
    %c0_21 = arith.constant 0 : index
    %45 = vector.load %arg5[%c3, %c0_21] : memref<12x16xf32, #tpu.memory_space<vmem>>, vector<1x16xf32>
    %46 = vector.broadcast %45 : vector<1x16xf32> to vector<16x16xf32>
    %47 = arith.mulf %44, %46 : vector<16x16xf32>
    %c4 = arith.constant 4 : index
    %c0_22 = arith.constant 0 : index
    %48 = vector.load %arg5[%c4, %c0_22] : memref<12x16xf32, #tpu.memory_space<vmem>>, vector<1x16xf32>
    %49 = vector.broadcast %48 : vector<1x16xf32> to vector<16x16xf32>
    %50 = arith.addf %47, %49 : vector<16x16xf32>
    %cst_23 = arith.constant 0.00999999977 : f32
    %51 = vector.broadcast %cst_23 : f32 to vector<16x16xf32>
    %52 = arith.mulf %51, %50 : vector<16x16xf32>
    %53 = arith.maximumf %50, %52 : vector<16x16xf32>
    %c0_24 = arith.constant 0 : index
    %c0_25 = arith.constant 0 : index
    %54 = vector.load %arg4[%c0_24, %c0_25] : memref<16x4xf32, #tpu.memory_space<vmem>>, vector<16x4xf32>
    %c7 = arith.constant 7 : index
    %c0_26 = arith.constant 0 : index
    %55 = vector.load %arg5[%c7, %c0_26] : memref<12x16xf32, #tpu.memory_space<vmem>>, vector<1x4xf32>
    %c8 = arith.constant 8 : index
    %c0_27 = arith.constant 0 : index
    %56 = vector.load %arg5[%c8, %c0_27] : memref<12x16xf32, #tpu.memory_space<vmem>>, vector<1x4xf32>
    %c9 = arith.constant 9 : index
    %c0_28 = arith.constant 0 : index
    %57 = vector.load %arg5[%c9, %c0_28] : memref<12x16xf32, #tpu.memory_space<vmem>>, vector<1x4xf32>
    %cst_29 = arith.constant dense<0.000000e+00> : vector<16x4xf32>
    %58 = tpu.matmul %53, %54, %cst_29 {dimension_numbers = #tpu.dot_dimension_numbers<[1], [0], [0], [1], [0, 0, 1, 1], [], []>} : vector<16x16xf32>, vector<16x4xf32>, vector<16x4xf32> -> vector<16x4xf32>
    %59 = vector.broadcast %56 : vector<1x4xf32> to vector<16x4xf32>
    %60 = arith.mulf %58, %59 : vector<16x4xf32>
    %cst_30 = arith.constant dense<0.000000e+00> : vector<16xf32>
    %61 = vector.multi_reduction <add>, %60, %cst_30 [1] : vector<16x4xf32> to vector<16xf32>
    %62 = vector.shape_cast %61 : vector<16xf32> to vector<16x1xf32>
    "tpu.trace_start"() <{level = 10 : i32, message = "of,nf->on"}> : () -> ()
    %cst_31 = arith.constant dense<0.000000e+00> : vector<1x16xf32>
    %63 = tpu.matmul %55, %58, %cst_31 {dimension_numbers = #tpu.dot_dimension_numbers<[1], [1], [0], [0], [0, 0, 1, 0], [], []>} : vector<1x4xf32>, vector<16x4xf32>, vector<1x16xf32> -> vector<1x16xf32>
    "tpu.trace_stop"() : () -> ()
    %64 = vector.broadcast %62 : vector<16x1xf32> to vector<16x16xf32>
    %65 = vector.broadcast %63 : vector<1x16xf32> to vector<16x16xf32>
    %66 = arith.addf %64, %65 : vector<16x16xf32>
    %cst_32 = arith.constant 2.000000e-01 : f32
    %67 = vector.broadcast %cst_32 : f32 to vector<16x16xf32>
    %68 = arith.mulf %67, %66 : vector<16x16xf32>
    %69 = arith.maximumf %66, %68 : vector<16x16xf32>
    %70 = arith.addf %69, %6 : vector<16x16xf32>
    %cst_33 = arith.constant dense<0xFF800000> : vector<16xf32>
    %71 = vector.multi_reduction <maximumf>, %70, %cst_33 [1] : vector<16x16xf32> to vector<16xf32>
    %72 = vector.shape_cast %71 : vector<16xf32> to vector<16x1xf32>
    %73 = vector.broadcast %72 : vector<16x1xf32> to vector<16x16xf32>
    %74 = arith.subf %70, %73 : vector<16x16xf32>
    %75 = math.exp %74 : vector<16x16xf32>
    %cst_34 = arith.constant dense<0.000000e+00> : vector<16xf32>
    %76 = vector.multi_reduction <add>, %75, %cst_34 [1] : vector<16x16xf32> to vector<16xf32>
    %77 = vector.shape_cast %76 : vector<16xf32> to vector<16x1xf32>
    %78 = vector.broadcast %77 : vector<16x1xf32> to vector<16x16xf32>
    %79 = arith.divf %75, %78 : vector<16x16xf32>
    %cst_35 = arith.constant dense<0.000000e+00> : vector<16x4xf32>
    %80 = tpu.matmul %79, %58, %cst_35 {dimension_numbers = #tpu.dot_dimension_numbers<[1], [0], [0], [1], [0, 0, 1, 1], [], []>} : vector<16x16xf32>, vector<16x4xf32>, vector<16x4xf32> -> vector<16x4xf32>
    %81 = vector.broadcast %57 : vector<1x4xf32> to vector<16x4xf32>
    %82 = arith.addf %80, %81 : vector<16x4xf32>
    %cst_36 = arith.constant dense<0xFF800000> : vector<16xf32>
    %83 = vector.multi_reduction <maximumf>, %82, %cst_36 [1] : vector<16x4xf32> to vector<16xf32>
    %84 = vector.shape_cast %83 : vector<16xf32> to vector<16x1xf32>
    %85 = vector.broadcast %84 : vector<16x1xf32> to vector<16x4xf32>
    %86 = arith.subf %82, %85 : vector<16x4xf32>
    %87 = math.exp %86 : vector<16x4xf32>
    %cst_37 = arith.constant dense<0.000000e+00> : vector<16xf32>
    %88 = vector.multi_reduction <add>, %87, %cst_37 [1] : vector<16x4xf32> to vector<16xf32>
    %89 = vector.shape_cast %88 : vector<16xf32> to vector<16x1xf32>
    %90 = math.log %89 : vector<16x1xf32>
    %91 = vector.broadcast %90 : vector<16x1xf32> to vector<16x4xf32>
    %92 = arith.subf %86, %91 : vector<16x4xf32>
    %93 = vector.extract_strided_slice %92 {offsets = [0, 1], sizes = [16, 1], strides = [1, 1]} : vector<16x4xf32> to vector<16x1xf32>
    %94 = math.exp %93 : vector<16x1xf32>
    %c0_38 = arith.constant 0 : index
    %c0_39 = arith.constant 0 : index
    %95 = vector.load %arg2[%c0_38, %c0_39] : memref<16x2xf32, #tpu.memory_space<vmem>>, vector<16x1xf32>
    %96 = arith.fptosi %95 : vector<16x1xf32> to vector<16x1xi32>
    %c0_40 = arith.constant 0 : index
    %c1_41 = arith.constant 1 : index
    %97 = vector.load %arg2[%c0_40, %c1_41] : memref<16x2xf32, #tpu.memory_space<vmem>>, vector<16x1xf32>
    %98 = tpu.iota {dimensions = array<i32: 1>} : vector<16x4xi32>
    %99 = vector.broadcast %96 : vector<16x1xi32> to vector<16x4xi32>
    %100 = arith.cmpi eq, %98, %99 : vector<16x4xi32>
    %101 = arith.extui %100 : vector<16x4xi1> to vector<16x4xi32>
    %102 = arith.sitofp %101 : vector<16x4xi32> to vector<16x4xf32>
    %103 = arith.mulf %92, %102 : vector<16x4xf32>
    %cst_42 = arith.constant dense<0.000000e+00> : vector<16xf32>
    %104 = vector.multi_reduction <add>, %103, %cst_42 [1] : vector<16x4xf32> to vector<16xf32>
    %105 = vector.shape_cast %104 : vector<16xf32> to vector<16x1xf32>
    %106 = arith.mulf %105, %97 : vector<16x1xf32>
    %cst_43 = arith.constant dense<0.000000e+00> : vector<1xf32>
    %107 = vector.multi_reduction <add>, %106, %cst_43 [0] : vector<16x1xf32> to vector<1xf32>
    %108 = vector.shape_cast %107 : vector<1xf32> to vector<1x1xf32>
    %cst_44 = arith.constant dense<0.000000e+00> : vector<1xf32>
    %109 = vector.multi_reduction <add>, %97, %cst_44 [0] : vector<16x1xf32> to vector<1xf32>
    %110 = vector.shape_cast %109 : vector<1xf32> to vector<1x1xf32>
    %111 = arith.divf %108, %110 : vector<1x1xf32>
    %cst_45 = arith.constant 0.000000e+00 : f32
    %112 = vector.broadcast %cst_45 : f32 to vector<1x1xf32>
    %113 = arith.subf %112, %111 : vector<1x1xf32>
    %114 = vector.extract %113[0, 0] : f32 from vector<1x1xf32>
    %c0_46 = arith.constant 0 : index
    %c0_47 = arith.constant 0 : index
    %115 = memref.load %arg8[%c0_46, %c0_47] : memref<1x1xf32, #tpu.memory_space<smem>>
    memref.store %114, %arg8[%c0_46, %c0_47] : memref<1x1xf32, #tpu.memory_space<smem>>
    %c10 = arith.constant 10 : index
    %c0_48 = arith.constant 0 : index
    %116 = vector.load %arg5[%c10, %c0_48] : memref<12x16xf32, #tpu.memory_space<vmem>>, vector<1x8xf32>
    %117 = arith.negf %116 : vector<1x8xf32>
    %118 = math.exp %117 : vector<1x8xf32>
    %cst_49 = arith.constant 1.000000e+00 : f32
    %119 = vector.broadcast %cst_49 : f32 to vector<1x8xf32>
    %120 = arith.addf %119, %118 : vector<1x8xf32>
    %121 = arith.divf %119, %120 : vector<1x8xf32>
    %cst_50 = arith.constant 2.22044605E-16 : f32
    %122 = vector.broadcast %cst_50 : f32 to vector<1x8xf32>
    %123 = arith.addf %121, %122 : vector<1x8xf32>
    %124 = math.log %123 : vector<1x8xf32>
    %cst_51 = arith.constant 1.000000e+00 : f32
    %125 = vector.broadcast %cst_51 : f32 to vector<1x8xf32>
    %126 = arith.subf %125, %121 : vector<1x8xf32>
    %cst_52 = arith.constant 2.22044605E-16 : f32
    %127 = vector.broadcast %cst_52 : f32 to vector<1x8xf32>
    %128 = arith.addf %126, %127 : vector<1x8xf32>
    %129 = math.log %128 : vector<1x8xf32>
    %130 = arith.subf %124, %129 : vector<1x8xf32>
    %cst_53 = arith.constant 5.000000e-01 : f32
    %131 = math.log %cst_53 : f32
    %132 = vector.broadcast %131 : f32 to vector<1x8xf32>
    %133 = arith.addf %130, %132 : vector<1x8xf32>
    %cst_54 = arith.constant 5.000000e-01 : f32
    %134 = math.log %cst_54 : f32
    %135 = vector.broadcast %134 : f32 to vector<1x8xf32>
    %136 = arith.subf %133, %135 : vector<1x8xf32>
    %cst_55 = arith.constant 1.000000e-01 : f32
    %137 = vector.broadcast %cst_55 : f32 to vector<1x8xf32>
    %138 = arith.divf %136, %137 : vector<1x8xf32>
    %139 = arith.negf %138 : vector<1x8xf32>
    %140 = math.exp %139 : vector<1x8xf32>
    %cst_56 = arith.constant 1.000000e+00 : f32
    %141 = vector.broadcast %cst_56 : f32 to vector<1x8xf32>
    %142 = arith.addf %141, %140 : vector<1x8xf32>
    %143 = arith.divf %141, %142 : vector<1x8xf32>
    %cst_57 = arith.constant 1.000000e+00 : f32
    %144 = vector.broadcast %cst_57 : f32 to vector<1x8xf32>
    %145 = arith.subf %144, %143 : vector<1x8xf32>
    %c11 = arith.constant 11 : index
    %c0_58 = arith.constant 0 : index
    %146 = vector.load %arg5[%c11, %c0_58] : memref<12x16xf32, #tpu.memory_space<vmem>>, vector<1x8xf32>
    %147 = arith.negf %146 : vector<1x8xf32>
    %148 = math.exp %147 : vector<1x8xf32>
    %cst_59 = arith.constant 1.000000e+00 : f32
    %149 = vector.broadcast %cst_59 : f32 to vector<1x8xf32>
    %150 = arith.addf %149, %148 : vector<1x8xf32>
    %151 = arith.divf %149, %150 : vector<1x8xf32>
    %152 = vector.broadcast %145 : vector<1x8xf32> to vector<16x8xf32>
    %153 = arith.mulf %0, %152 : vector<16x8xf32>
    %154 = vector.broadcast %151 : vector<1x8xf32> to vector<16x8xf32>
    %155 = arith.mulf %153, %154 : vector<16x8xf32>
    %cst_60 = arith.constant dense<0.000000e+00> : vector<16xf32>
    %156 = vector.multi_reduction <add>, %155, %cst_60 [1] : vector<16x8xf32> to vector<16xf32>
    %157 = vector.shape_cast %156 : vector<16xf32> to vector<16x1xf32>
    %cst_61 = arith.constant 9.99999997E-7 : f32
    %158 = vector.broadcast %cst_61 : f32 to vector<16x1xf32>
    %159 = arith.addf %157, %158 : vector<16x1xf32>
    %160 = vector.broadcast %159 : vector<16x1xf32> to vector<16x8xf32>
    %161 = arith.divf %155, %160 : vector<16x8xf32>
    "tpu.trace_start"() <{level = 10 : i32, message = "if,jf->ij"}> : () -> ()
    %cst_62 = arith.constant dense<0.000000e+00> : vector<16x16xf32>
    %162 = tpu.matmul %155, %161, %cst_62 {dimension_numbers = #tpu.dot_dimension_numbers<[1], [1], [0], [0], [0, 0, 1, 0], [], []>} : vector<16x8xf32>, vector<16x8xf32>, vector<16x16xf32> -> vector<16x16xf32>
    "tpu.trace_stop"() : () -> ()
    %c0_63 = arith.constant 0 : index
    %c0_64 = arith.constant 0 : index
    %163 = vector.load %arg7[%c0_63, %c0_64] : memref<16x16xf32, #tpu.memory_space<vmem>>, vector<16x16xf32>
    tpu.vector_store %arg7[%c0_63, %c0_64], %162 {strides = array<i32>} : memref<16x16xf32, #tpu.memory_space<vmem>>, vector<16x16xf32>,
    %cst_65 = arith.constant 1.000000e+00 : f32
    %164 = vector.broadcast %cst_65 : f32 to vector<16x1xf32>
    %165 = arith.subf %164, %94 : vector<16x1xf32>
    %166 = tpu.concatenate %165, %94 in 1 : vector<16x1xf32>, vector<16x1xf32> -> vector<16x2xf32>
    %cst_66 = arith.constant dense<0.000000e+00> : vector<16x2xf32>
    %167 = tpu.matmul %162, %166, %cst_66 {dimension_numbers = #tpu.dot_dimension_numbers<[1], [0], [0], [1], [0, 0, 1, 1], [], []>} : vector<16x16xf32>, vector<16x2xf32>, vector<16x2xf32> -> vector<16x2xf32>
    %cst_67 = arith.constant dense<0xFF800000> : vector<16xf32>
    %168 = vector.multi_reduction <maximumf>, %167, %cst_67 [1] : vector<16x2xf32> to vector<16xf32>
    %169 = vector.shape_cast %168 : vector<16xf32> to vector<16x1xf32>
    %170 = vector.broadcast %169 : vector<16x1xf32> to vector<16x2xf32>
    %171 = arith.subf %167, %170 : vector<16x2xf32>
    %172 = math.exp %171 : vector<16x2xf32>
    %cst_68 = arith.constant dense<0.000000e+00> : vector<16xf32>
    %173 = vector.multi_reduction <add>, %172, %cst_68 [1] : vector<16x2xf32> to vector<16xf32>
    %174 = vector.shape_cast %173 : vector<16xf32> to vector<16x1xf32>
    %175 = tpu.reciprocal %174 {approx = true} : vector<16x1xf32> -> vector<16x1xf32>
    %176 = vector.broadcast %175 : vector<16x1xf32> to vector<16x2xf32>
    %177 = arith.mulf %172, %176 : vector<16x2xf32>
    %c0_69 = arith.constant 0 : index
    %c0_70 = arith.constant 0 : index
    %178 = vector.load %arg6[%c0_69, %c0_70] : memref<16x2xf32, #tpu.memory_space<vmem>>, vector<16x2xf32>
    tpu.vector_store %arg6[%c0_69, %c0_70], %177 {strides = array<i32>} : memref<16x2xf32, #tpu.memory_space<vmem>>, vector<16x2xf32>,
    return
  }
}

</mosaic_0001>

<bundles_post_ra>
// kernel: forward.1
= control target key start
LH: loop header
LB: loop body
LE: loop exit
PB: predicated region body
PF: predicated region fallthrough
CT: control target
= control target key end

     0   :  { %14 = vsyncpa [#allocation3], 0  ;;  %vm40_vm0 = vcmask 64512   ;;  %s1148_s0 = inlined_call_operand.vmem [shape: f32[16,8], index: 0, kind: input, shape index: {}]   ;;  %s1149_s1 = inlined_call_operand.vmem [shape: f32[16,16], index: 1, kind: input, shape index: {}]   ;;  %s1150_s2 = inlined_call_operand.vmem [shape: f32[16,2], index: 2, kind: input, shape index: {}]   ;;  %s1151_s3 = inlined_call_operand.vmem [shape: f32[8,16], index: 3, kind: input, shape index: {}]   ;;  %s1152_s4 = inlined_call_operand.vmem [shape: f32[16,4], index: 4, kind: input, shape index: {}]   ;;  %s1153_s5 = inlined_call_operand.vmem [shape: f32[12,16], index: 5, kind: input, shape index: {}]   ;;  %s1154_s6 = inlined_call_operand.vmem [shape: f32[16,2], index: 6, kind: output, shape index: {0}]   ;;  %s1155_s7 = inlined_call_operand.hbm [shape: f32[16,16], index: 7, kind: output, shape index: {1}]   ;;  %s1156_s8 = inlined_call_operand.hbm [shape: f32[1,1], index: 8, kind: output, shape index: {2}]  }
   0x1   :  { %v36_v0 = vld [vmem:[%s1151_s3] sm:$0xff]  ;;  %v485_v2 = vld [vmem:[%s1153_s5 + $0xa] sm:$0x1] }
   0x2   :  { %v974_v1 = vld [vmem:[%s1148_s0] sm:$0xff]  ;;  %62 = vmatpush.msra.mxu0 %v36_v0  ;;  %v764_v3 = vmul.f32 -1.442695, %v485_v2 }
   0x3   :  { %748 = vmatmul.msk.f32.vlgmr.msra.gmra.mxu0 %vm40_vm0, %v974_v1 }
   0x4   :  { %812 = vpow2.f32 %v764_v3 }
   0x5   :  { %15 = vsyncpa [#allocation4], 0  ;;  %v984_v4 = vld [vmem:[%s1148_s0 + $0x8] sm:$0xff]  ;;  %v914_v10 = vmov 0.1   ;;  %vm73_vm14 = vcmask 130048  }
   0x6   :  { %v543_v34 = vld [vmem:[%s1153_s5 + $0xb] sm:$0x1]  ;;  %s919_s19 = smov [#allocation2]   ;;  %s719_s22 = sshll.u32 %s1155_s7, 4  ;;  %s720_s22 = int_to_ptr.hbm [resolvable:$true] %s719_s22 }
   0x7   :  { %v767_v35 = vmul.f32 -1.442695, %v543_v34  ;;  %s717_s20 = sshll.u32 %s919_s19, 4  ;;  %s920_s23 = smov 128   ;;  %s718_s20 = int_to_ptr.vmem [resolvable:$true] %s717_s20 }
   0x8   :  { %s921_s24 = smov 8   ;;  %s731_s27 = sshll.u32 %s1156_s8, 4  ;;  %s732_s27 = int_to_ptr.hbm [resolvable:$true] %s731_s27 }
   0x9   :  { %s922_s28 = smov [#allocation5]  }
   0xa   :  { %v813_v5 = vpop.eup %812 }
   0xb   :  { %v489_v6 = vadd.f32 1.0, %v813_v5  ;;  %749 = vmatmul.msk.f32.gmra.mxu0 %vm40_vm0, %v984_v4  ;;  %v805_v5 = vld [vmem:[%s1153_s5 + $0x1] ss:$0 sm:$0xff] }
   0xd   :  { %814 = vrcp.f32 %v489_v6  ;;  %v501_v9 = vand.u32 2147483648, %v489_v6  ;;  %vm495_vm1 = vweird.f32 %v489_v6  ;;  %v499_v12 = vand.u32 2147483647, %v489_v6 }
   0xe   :  { %816 = vrcp.f32 %v914_v10 }
   0xf   :  { %v502_v14 = vor.u32 1.1754944e-38, %v501_v9  ;;  %vm500_vm4 = vcmp.eq.f32.partialorder %v499_v12, 8.507059e+37 }
  0x13   :  { %v815_v7 = vpop.eup %814 }
  0x14   :  { %v491_v8 = vmul.f32 %v815_v7, %v489_v6  ;;  %vm496_vm2 = vweird.f32 %v815_v7  ;;  %v817_v16 = vpop.eup %816 }
  0x15   :  { %vm497_vm3 = vmor %vm495_vm1, %vm496_vm2  ;;  %v516_v21 = vmul.f32 0.1, %v817_v16  ;;  %vm520_vm5 = vweird.f32 %v817_v16 }
  0x16   :  { %v492_v11 = vsub.f32 1.0, %v491_v8 }
  0x17   :  { %v517_v23 = vsub.f32 1.0, %v516_v21 }
  0x18   :  { %v493_v13 = vmul.f32 %v815_v7, %v492_v11  ;;  %v37_v11 = vld [vmem:[%s1153_s5] sm:$0x1] }
  0x19   :  { %v518_v25 = vmul.f32 %v817_v16, %v517_v23 }
  0x1a   :  { %v494_v15 = vadd.f32 %v815_v7, %v493_v13 }
  0x1b   :  { %v519_v29 = vadd.f32 %v817_v16, %v518_v25 }
  0x1c   :  { %v498_v17 = vsel %vm497_vm3, %v815_v7, %v494_v15 }
  0x1d   :  { %v503_v18 = vsel %vm500_vm4, %v502_v14, %v498_v17  ;;  %v521_v32 = vsel %vm520_vm5, %v817_v16, %v519_v29  ;;  %v30_v14 = vld [vmem:[%s1149_s1] sm:$0xff] }
  0x1e   :  { %v505_v19 = vadd.f32 2.220446e-16, %v503_v18  ;;  %v508_v20 = vsub.f32 1.0, %v503_v18  ;;  %vm32_vm15 = vcmp.gt.f32.partialorder %v30_v14, 0.0 }
  0x20   :  { %818 = vlog2.f32 %v505_v19  ;;  %v509_v22 = vadd.f32 2.220446e-16, %v508_v20  ;;  %v915_v20 = vmov -1e+30  }
  0x21   :  { %v1016_v21 = vsel %vm32_vm15, 0.0, %v915_v20 }
  0x22   :  { %820 = vlog2.f32 %v509_v22  ;;  %v31_v22 = vld [vmem:[%s1149_s1 + $0x8] sm:$0xff] }
  0x23   :  { %822 = vpow2.f32 %v767_v35  ;;  %vm33_vm1 = vcmp.gt.f32.partialorder %v31_v22, 0.0 }
  0x26   :  { %v819_v24 = vpop.eup %818 }
  0x27   :  { %v507_v26 = vmul.f32 0.6931472, %v819_v24 }
  0x28   :  { %v821_v27 = vpop.eup %820 }
  0x29   :  { %v511_v28 = vmul.f32 0.6931472, %v821_v27  ;;  %v823_v38 = vpop.eup %822 }
  0x2a   :  { %v547_v39 = vadd.f32 1.0, %v823_v38 }
  0x2b   :  { %v512_v30 = vsub.f32 %v507_v26, %v511_v28  ;;  %v1023_v28 = vsel %vm33_vm1, 0.0, %v915_v20 }
  0x2c   :  { %vm553_vm6 = vweird.f32 %v547_v39  ;;  %v559_v51 = vand.u32 2147483648, %v547_v39  ;;  %v557_v54 = vand.u32 2147483647, %v547_v39 }
  0x2d   :  { %v513_v31 = vadd.f32 -0.6931472, %v512_v30 }
  0x2e   :  { %v560_v57 = vor.u32 1.1754944e-38, %v559_v51  ;;  %vm558_vm13 = vcmp.eq.f32.partialorder %v557_v54, 8.507059e+37 }
  0x2f   :  { %v765_v33 = vadd.f32 0.6931472, %v513_v31 }
  0x31   :  { %v522_v36 = vmul.f32 %v765_v33, %v521_v32 }
  0x33   :  { %v766_v37 = vmul.f32 -1.442695, %v522_v36 }
  0x35   :  { %824 = vpow2.f32 %v766_v37 }
  0x36   :  { %826 = vrcp.f32 %v547_v39 }
  0x3b   :  { %v825_v40 = vpop.eup %824 }
  0x3c   :  { %v526_v41 = vadd.f32 1.0, %v825_v40  ;;  %v827_v42 = vpop.eup %826 }
  0x3d   :  { %v549_v43 = vmul.f32 %v827_v42, %v547_v39  ;;  %vm554_vm7 = vweird.f32 %v827_v42 }
  0x3e   :  { %828 = vrcp.f32 %v526_v41  ;;  %v538_v47 = vand.u32 2147483648, %v526_v41  ;;  %vm532_vm8 = vweird.f32 %v526_v41  ;;  %v536_v50 = vand.u32 2147483647, %v526_v41  ;;  %vm555_vm10 = vmor %vm553_vm6, %vm554_vm7 }
  0x3f   :  { %v550_v45 = vsub.f32 1.0, %v549_v43 }
  0x40   :  { %v539_v55 = vor.u32 1.1754944e-38, %v538_v47  ;;  %vm537_vm12 = vcmp.eq.f32.partialorder %v536_v50, 8.507059e+37 }
  0x41   :  { %v551_v48 = vmul.f32 %v827_v42, %v550_v45 }
  0x43   :  { %v552_v53 = vadd.f32 %v827_v42, %v551_v48 }
  0x44   :  { %v829_v44 = vpop.eup %828 }
  0x45   :  { %v528_v46 = vmul.f32 %v829_v44, %v526_v41  ;;  %vm533_vm9 = vweird.f32 %v829_v44  ;;  %v556_v59 = vsel %vm555_vm10, %v827_v42, %v552_v53 }
  0x46   :  { %vm534_vm11 = vmor %vm532_vm8, %vm533_vm9  ;;  %v991_v62 = vsel %vm558_vm13, %v560_v57, %v556_v59  ;;  %vm264_vm13 = vcmask 31744  }
  0x47   :  { %v529_v49 = vsub.f32 1.0, %v528_v46  ;;  %v566_v2 = vperm.slane %v991_v62, 0 }
  0x49   :  { %v530_v52 = vmul.f32 %v829_v44, %v529_v49 }
  0x4b   :  { %v531_v56 = vadd.f32 %v829_v44, %v530_v52 }
  0x4d   :  { %v535_v58 = vsel %vm534_vm11, %v829_v44, %v531_v56 }
  0x4e   :  { %v540_v60 = vsel %vm537_vm12, %v539_v55, %v535_v58 }
  0x4f   :  { %v542_v61 = vsub.f32 1.0, %v540_v60 }
  0x51   :  { %v993_v63 = vperm.slane %v542_v61, 0 }
  0x53   :  { %v564_v0 = vmul.f32 %v993_v63, %v974_v1 }
  0x55   :  { %v1000_v3 = vmul.f32 %v566_v2, %v564_v0 }
  0x80   :  { %v64_v6 = vpop.f32.mrf.mxu0 }
  0x81   :  { %v71_v7 = vmul.f32 %v805_v5, %v64_v6 }
  0x83   :  { %v74_v8 = vsel %vm73_vm14, %v71_v7, 0.0  ;;  %v196_v7 = vld [vmem:[%s1153_s5 + $0x6] sm:$0x1] }
  0x84   :  { %75 = vadd.xlane.f32.xlu0 %v74_v8  ;;  %v197_v8 = vadd.f32 1e-05, %v196_v7 }
  0x86   :  { %vm204_vm10 = vweird.f32 %v197_v8 }
  0x88   :  { %v67_v9 = vpop.f32.mrf.mxu0 }
  0x89   :  { %750 = vmatpush.xpose.msk.msra.mxu1 %vm73_vm14, %v67_v9  ;;  %774 = vmatpush.msra.mxu2 %v67_v9  ;;  %v72_v1 = vmul.f32 %v805_v5, %v67_v9 }
  0x8b   :  { %775 = vmatpush.msra.mxu2 %v64_v6  ;;  %v77_v10 = vsel %vm73_vm14, %v72_v1, 0.0  ;;  %v228_v1 = vld [vmem:[%s1152_s4 + $0x8] sm:$0xff] }
  0x8c   :  { %78 = vadd.xlane.f32.xlu0 %v77_v10  ;;  %252 = vmatpush.msra.mxu3 %v228_v1 }
  0x8d   :  { %751 = vmatpush.xpose.msk.msra.mxu1 %vm73_vm14, %v64_v6 }
  0x90   :  { %752 = vmatmul.msk.f32.vlgmr.msra.gmra.mxu1 %vm73_vm14, %v37_v11 }
  0x91   :  { %187 = vmatpush.msrb.mxu1 %v67_v9 }
  0x93   :  { %188 = vmatpush.msrb.mxu1 %v64_v6 }
  0xf7   :  { %v76_v12 = vpop.xlane.xlu0 %75 }
  0xff   :  { %v79_v16 = vpop.xlane.xlu0 %78 }
 0x10d   :  { %v106_v13 = vpop.f32.mrf.mxu1 }
 0x10e   :  { %v109_v15 = vperm.slane %v106_v13, 0 }
 0x110   :  { %v110_v17 = vadd.f32 %v109_v15, %v76_v12  ;;  %v111_v18 = vadd.f32 %v109_v15, %v79_v16  ;;  %v227_v12 = vld [vmem:[%s1152_s4] sm:$0xff] }
 0x111   :  { %253 = vmatpush.msra.mxu3 %v227_v12  ;;  %v806_v16 = vld [vmem:[%s1153_s5 + $0x2] ss:$0 sm:$0xff] }
 0x112   :  { %v112_v19 = vmul.f32 0.2, %v110_v17  ;;  %v113_v23 = vmul.f32 0.2, %v111_v18 }
 0x114   :  { %v114_v24 = vmax.f32 %v110_v17, %v112_v19  ;;  %v115_v27 = vmax.f32 %v111_v18, %v113_v23  ;;  %v807_v18 = vld [vmem:[%s1153_s5 + $0x5] ss:$0 sm:$0xff] }
 0x116   :  { %v116_v25 = vadd.f32 %v114_v24, %v1016_v21  ;;  %v117_v29 = vadd.f32 %v115_v27, %v1023_v28  ;;  %v808_v24 = vld [vmem:[%s1153_s5 + $0x3] ss:$0 sm:$0xff] }
 0x118   :  { %v118_v26 = vsel %vm73_vm14, %v116_v25, -inf  ;;  %v121_v30 = vsel %vm73_vm14, %v117_v29, -inf }
 0x119   :  { %119 = vmax.xlane.f32.xlu1 %v118_v26  ;;  %v809_v26 = vld [vmem:[%s1153_s5 + $0x4] ss:$0 sm:$0xff] }
 0x121   :  { %122 = vmax.xlane.f32.xlu1 %v121_v30 }
 0x18c   :  { %v120_v31 = vpop.xlane.xlu1 %119 }
 0x18d   :  { %v124_v32 = vsub.f32 %v116_v25, %v120_v31 }
 0x18f   :  { %v126_v33 = vmul.f32 1.442695, %v124_v32 }
 0x191   :  { %830 = vpow2.f32 %v126_v33 }
 0x194   :  { %v123_v34 = vpop.xlane.xlu1 %122 }
 0x195   :  { %v125_v35 = vsub.f32 %v117_v29, %v123_v34 }
 0x197   :  { %v831_v36 = vpop.eup %830  ;;  %v128_v37 = vmul.f32 1.442695, %v125_v35 }
 0x198   :  { %v130_v38 = vsel %vm73_vm14, %v831_v36, 0.0 }
 0x199   :  { %832 = vpow2.f32 %v128_v37  ;;  %131 = vadd.xlane.f32.xlu2 %v130_v38 }
 0x19f   :  { %v833_v39 = vpop.eup %832 }
 0x1a0   :  { %v133_v40 = vsel %vm73_vm14, %v833_v39, 0.0 }
 0x1a1   :  { %134 = vadd.xlane.f32.xlu2 %v133_v40  ;;  %v810_v40 = vld [vmem:[%s1153_s5 + $0x8] ss:$0 sm:$0xff] }
 0x20c   :  { %v132_v41 = vpop.xlane.xlu2 %131 }
 0x20d   :  { %834 = vrcp.f32 %v132_v41  ;;  %v147_v46 = vand.u32 2147483648, %v132_v41  ;;  %v145_v48 = vand.u32 2147483647, %v132_v41  ;;  %vm141_vm3 = vweird.f32 %v132_v41 }
 0x20f   :  { %v148_v51 = vor.u32 1.1754944e-38, %v147_v46  ;;  %vm146_vm5 = vcmp.eq.f32.partialorder %v145_v48, 8.507059e+37 }
 0x213   :  { %v835_v42 = vpop.eup %834 }
 0x214   :  { %v137_v43 = vmul.f32 %v835_v42, %v132_v41  ;;  %v135_v44 = vpop.xlane.xlu2 %134  ;;  %vm142_vm2 = vweird.f32 %v835_v42 }
 0x215   :  { %836 = vrcp.f32 %v135_v44  ;;  %vm143_vm4 = vmor %vm141_vm3, %vm142_vm2  ;;  %v162_v57 = vand.u32 2147483648, %v135_v44  ;;  %v160_v59 = vand.u32 2147483647, %v135_v44  ;;  %vm156_vm7 = vweird.f32 %v135_v44 }
 0x216   :  { %v138_v45 = vsub.f32 1.0, %v137_v43  ;;  %838 = vrsqrt.f32 %v197_v8 }
 0x217   :  { %v163_v61 = vor.u32 1.1754944e-38, %v162_v57  ;;  %vm161_vm9 = vcmp.eq.f32.partialorder %v160_v59, 8.507059e+37 }
 0x218   :  { %v139_v47 = vmul.f32 %v835_v42, %v138_v45 }
 0x21a   :  { %v140_v49 = vadd.f32 %v835_v42, %v139_v47  ;;  %v229_v47 = vld [vmem:[%s1153_s5 + $0x7] sm:$0x1] }
 0x21b   :  { %v837_v50 = vpop.eup %836 }
 0x21c   :  { %v152_v52 = vmul.f32 %v837_v50, %v135_v44  ;;  %v144_v53 = vsel %vm143_vm4, %v835_v42, %v140_v49  ;;  %vm157_vm6 = vweird.f32 %v837_v50  ;;  %v839_v9 = vpop.eup %838 }
 0x21d   :  { %v149_v54 = vsel %vm146_vm5, %v148_v51, %v144_v53  ;;  %vm158_vm8 = vmor %vm156_vm7, %vm157_vm6  ;;  %v199_v10 = vmul.f32 %v839_v9, %v197_v8  ;;  %vm205_vm11 = vweird.f32 %v839_v9 }
 0x21e   :  { %v153_v55 = vsub.f32 1.0, %v152_v52  ;;  %v150_v56 = vmul.f32 %v831_v36, %v149_v54  ;;  %vm206_vm12 = vmor %vm204_vm10, %vm205_vm11 }
 0x21f   :  { %v200_v11 = vmul.f32 %v839_v9, %v199_v10 }
 0x220   :  { %v154_v58 = vmul.f32 %v837_v50, %v153_v55  ;;  %753 = vmatmul.msk.f32.vlgmr.msrb.gmra.mxu1 %vm73_vm14, %v150_v56 }
 0x221   :  { %v201_v13 = vmul.f32 0.5, %v200_v11  ;;  %v565_v11 = vmul.f32 %v993_v63, %v984_v4 }
 0x222   :  { %v155_v60 = vadd.f32 %v837_v50, %v154_v58 }
 0x223   :  { %v202_v14 = vsub.f32 1.5, %v201_v13  ;;  %v1075_v12 = vmul.f32 %v566_v2, %v565_v11  ;;  %v1103_v11 = vld [vmem:[%s1150_s2] sm:$0xff] }
 0x224   :  { %v159_v0 = vsel %vm158_vm8, %v837_v50, %v155_v60 }
 0x225   :  { %v164_v5 = vsel %vm161_vm9, %v163_v61, %v159_v0  ;;  %v203_v15 = vmul.f32 %v839_v9, %v202_v14  ;;  %v572_v13 = vsel %vm40_vm0, %v1075_v12, 0.0 }
 0x226   :  { %v165_v6 = vmul.f32 %v833_v39, %v164_v5 }
 0x227   :  { %v207_v17 = vsel %vm206_vm12, %v839_v9, %v203_v15 }
 0x228   :  { %754 = vmatmul.msk.f32.vlgmr.msra.gmra.mxu2 %vm73_vm14, %v165_v6  ;;  %v212_v22 = vperm.slane %v207_v17, 0 }
 0x29d   :  { %v190_v19 = vpop.f32.mrf.mxu1 }
 0x29e   :  { %v191_v20 = vadd.f32 %v806_v16, %v190_v19 }
 0x2a0   :  { %v210_v23 = vsub.f32 %v191_v20, %v807_v18 }
 0x2a2   :  { %v213_v25 = vmul.f32 %v212_v22, %v210_v23 }
 0x2a4   :  { %v217_v27 = vmul.f32 %v808_v24, %v213_v25 }
 0x2a6   :  { %v221_v29 = vadd.f32 %v809_v26, %v217_v27 }
 0x2a8   :  { %v223_v30 = vmul.f32 0.01, %v221_v29 }
 0x2aa   :  { %v225_v31 = vmax.f32 %v221_v29, %v223_v30 }
 0x2ab   :  { %v193_v32 = vpop.f32.mrf.mxu2 }
 0x2ac   :  { %v194_v33 = vadd.f32 %v806_v16, %v193_v32  ;;  %755 = vmatmul.msk.f32.vlgmr.msra.gmra.mxu3 %vm73_vm14, %v225_v31 }
 0x2ae   :  { %v211_v34 = vsub.f32 %v194_v33, %v807_v18 }
 0x2b0   :  { %v214_v35 = vmul.f32 %v212_v22, %v211_v34 }
 0x2b2   :  { %v218_v36 = vmul.f32 %v808_v24, %v214_v35 }
 0x2b4   :  { %v222_v37 = vadd.f32 %v809_v26, %v218_v36  ;;  %v569_v36 = vsel %vm40_vm0, %v1000_v3, 0.0 }
 0x2b6   :  { %v224_v38 = vmul.f32 0.01, %v222_v37 }
 0x2b8   :  { %v226_v39 = vmax.f32 %v222_v37, %v224_v38  ;;  %v811_v37 = vld [vmem:[%s1153_s5 + $0x9] ss:$0 sm:$0xff] }
 0x2ba   :  { %756 = vmatmul.msk.f32.gmra.mxu3 %vm73_vm14, %v226_v39 }
 0x32f   :  { %v255_v41 = vpop.f32.mrf.mxu3 }
 0x330   :  { %v262_v42 = vmul.f32 %v810_v40, %v255_v41 }
 0x332   :  { %v265_v43 = vsel %vm264_vm13, %v262_v42, 0.0 }
 0x333   :  { %266 = vadd.xlane.f32.xlu0 %v265_v43 }
 0x33d   :  { %v258_v44 = vpop.f32.mrf.mxu3 }
 0x33e   :  { %757 = vmatpush.xpose.msk.msra.mxu1 %vm264_vm13, %v258_v44  ;;  %378 = vmatpush.msrb.mxu0 %v258_v44  ;;  %v263_v45 = vmul.f32 %v810_v40, %v258_v44 }
 0x340   :  { %379 = vmatpush.msrb.mxu0 %v255_v41  ;;  %v268_v46 = vsel %vm264_vm13, %v263_v45, 0.0 }
 0x341   :  { %269 = vadd.xlane.f32.xlu1 %v268_v46 }
 0x342   :  { %758 = vmatpush.xpose.msk.msra.mxu1 %vm264_vm13, %v255_v41 }
 0x345   :  { %759 = vmatmul.msk.f32.vlgmr.msra.gmra.mxu1 %vm264_vm13, %v229_v47 }
 0x3a6   :  { %v267_v50 = vpop.xlane.xlu0 %266 }
 0x3b4   :  { %v270_v51 = vpop.xlane.xlu1 %269 }
 0x3c2   :  { %v297_v48 = vpop.f32.mrf.mxu1 }
 0x3c3   :  { %v300_v49 = vperm.slane %v297_v48, 0 }
 0x3c5   :  { %v301_v52 = vadd.f32 %v300_v49, %v267_v50  ;;  %v302_v53 = vadd.f32 %v300_v49, %v270_v51 }
 0x3c7   :  { %v303_v54 = vmul.f32 0.2, %v301_v52  ;;  %v304_v55 = vmul.f32 0.2, %v302_v53 }
 0x3c9   :  { %v305_v56 = vmax.f32 %v301_v52, %v303_v54  ;;  %v306_v57 = vmax.f32 %v302_v53, %v304_v55 }
 0x3cb   :  { %v308_v58 = vadd.f32 %v306_v57, %v1023_v28  ;;  %v307_v59 = vadd.f32 %v305_v56, %v1016_v21  ;;  %v916_v57 = vmov 0  }
 0x3cc   :  { %802 = vset.pattern.permute.xlu1 %v916_v57  ;;  %803 = vset.pattern.permute.xlu2 %v916_v57 }
 0x3cd   :  { %v312_v60 = vsel %vm73_vm14, %v308_v58, -inf  ;;  %v309_v61 = vsel %vm73_vm14, %v307_v59, -inf  ;;  %804 = vset.pattern.permute.xlu0 %v916_v57 }
 0x3ce   :  { %313 = vmax.xlane.f32.xlu0 %v312_v60  ;;  %310 = vmax.xlane.f32.xlu2 %v309_v61 }
 0x3d6   :  { %573 = vadd.xlane.f32.xlu0 %v572_v13 }
 0x441   :  { %v311_v0 = vpop.xlane.xlu2 %310  ;;  %v314_v5 = vpop.xlane.xlu0 %313 }
 0x442   :  { %v315_v6 = vsub.f32 %v307_v59, %v311_v0  ;;  %v316_v7 = vsub.f32 %v308_v58, %v314_v5 }
 0x444   :  { %v317_v8 = vmul.f32 1.442695, %v315_v6  ;;  %v319_v9 = vmul.f32 1.442695, %v316_v7 }
 0x446   :  { %840 = vpow2.f32 %v317_v8 }
 0x447   :  { %842 = vpow2.f32 %v319_v9 }
 0x449   :  { %v574_v44 = vpop.xlane.xlu0 %573 }
 0x44a   :  { %v576_v45 = vadd.f32 1e-06, %v574_v44 }
 0x44c   :  { %v841_v1 = vpop.eup %840  ;;  %v603_v50 = vand.u32 2147483648, %v576_v45  ;;  %vm597_vm8 = vweird.f32 %v576_v45  ;;  %v601_v52 = vand.u32 2147483647, %v576_v45 }
 0x44d   :  { %v843_v10 = vpop.eup %842  ;;  %v321_v28 = vsel %vm73_vm14, %v841_v1, 0.0 }
 0x44e   :  { %322 = vadd.xlane.f32.xlu1 %v321_v28  ;;  %v324_v21 = vsel %vm73_vm14, %v843_v10, 0.0  ;;  %v604_v53 = vor.u32 1.1754944e-38, %v603_v50  ;;  %vm602_vm11 = vcmp.eq.f32.partialorder %v601_v52, 8.507059e+37 }
 0x44f   :  { %325 = vadd.xlane.f32.xlu2 %v324_v21 }
 0x456   :  { %570 = vadd.xlane.f32.xlu1 %v569_v36 }
 0x4c1   :  { %v323_v14 = vpop.xlane.xlu1 %322 }
 0x4c2   :  { %844 = vrcp.f32 %v323_v14  ;;  %v326_v15 = vpop.xlane.xlu2 %325  ;;  %v338_v22 = vand.u32 2147483648, %v323_v14  ;;  %v336_v62 = vand.u32 2147483647, %v323_v14  ;;  %vm332_vm1 = vweird.f32 %v323_v14 }
 0x4c3   :  { %846 = vrcp.f32 %v326_v15  ;;  %v353_v27 = vand.u32 2147483648, %v326_v15  ;;  %vm347_vm5 = vweird.f32 %v326_v15  ;;  %v351_v31 = vand.u32 2147483647, %v326_v15 }
 0x4c4   :  { %v339_v24 = vor.u32 1.1754944e-38, %v338_v22  ;;  %vm337_vm3 = vcmp.eq.f32.partialorder %v336_v62, 8.507059e+37  ;;  %848 = vrcp.f32 %v576_v45 }
 0x4c5   :  { %v354_v33 = vor.u32 1.1754944e-38, %v353_v27  ;;  %vm352_vm7 = vcmp.eq.f32.partialorder %v351_v31, 8.507059e+37 }
 0x4c8   :  { %v845_v16 = vpop.eup %844 }
 0x4c9   :  { %v847_v17 = vpop.eup %846  ;;  %v328_v18 = vmul.f32 %v845_v16, %v323_v14  ;;  %vm333_vm15 = vweird.f32 %v845_v16  ;;  %v777_v14 = vceil.f32 %v1103_v11 }
 0x4ca   :  { %v343_v19 = vmul.f32 %v847_v17, %v326_v15  ;;  %vm334_vm2 = vmor %vm332_vm1, %vm333_vm15  ;;  %vm348_vm4 = vweird.f32 %v847_v17  ;;  %v849_v46 = vpop.eup %848  ;;  %v778_v15 = vfloor.f32 %v1103_v11  ;;  %vm776_vm15 = vcmp.lt.s32.totalorder %v1103_v11, 0 }
 0x4cb   :  { %v329_v20 = vsub.f32 1.0, %v328_v18  ;;  %vm349_vm6 = vmor %vm347_vm5, %vm348_vm4  ;;  %v593_v47 = vmul.f32 %v849_v46, %v576_v45  ;;  %vm598_vm9 = vweird.f32 %v849_v46  ;;  %v571_v18 = vpop.xlane.xlu1 %570 }
 0x4cc   :  { %v344_v23 = vsub.f32 1.0, %v343_v19  ;;  %vm599_vm10 = vmor %vm597_vm8, %vm598_vm9  ;;  %v575_v19 = vadd.f32 1e-06, %v571_v18 }
 0x4cd   :  { %v330_v4 = vmul.f32 %v845_v16, %v329_v20  ;;  %v594_v48 = vsub.f32 1.0, %v593_v47 }
 0x4ce   :  { %v345_v63 = vmul.f32 %v847_v17, %v344_v23  ;;  %v588_v62 = vand.u32 2147483648, %v575_v19  ;;  %vm582_vm1 = vweird.f32 %v575_v19 }
 0x4cf   :  { %v331_v2 = vadd.f32 %v845_v16, %v330_v4  ;;  %v595_v49 = vmul.f32 %v849_v46, %v594_v48 }
 0x4d0   :  { %v346_v26 = vadd.f32 %v847_v17, %v345_v63 }
 0x4d1   :  { %v335_v25 = vsel %vm334_vm2, %v845_v16, %v331_v2  ;;  %v596_v51 = vadd.f32 %v849_v46, %v595_v49  ;;  %v779_v16 = vsel %vm776_vm15, %v777_v14, %v778_v15  ;;  %v586_v2 = vand.u32 2147483647, %v575_v19 }
 0x4d2   :  { %v340_v29 = vsel %vm337_vm3, %v339_v24, %v335_v25  ;;  %v350_v32 = vsel %vm349_vm6, %v847_v17, %v346_v26  ;;  %v780_v17 = vcvt.f32.s32 %v779_v16  ;;  %v589_v24 = vor.u32 1.1754944e-38, %v588_v62 }
 0x4d3   :  { %v341_v30 = vmul.f32 %v841_v1, %v340_v29  ;;  %v355_v34 = vsel %vm352_vm7, %v354_v33, %v350_v32  ;;  %v600_v54 = vsel %vm599_vm10, %v849_v46, %v596_v51  ;;  %v1095_v1 = vld [vmem:[%s1150_s2 + $0x8] sm:$0xff]  ;;  %vm587_vm4 = vcmp.eq.f32.partialorder %v586_v2, 8.507059e+37  ;;  %s918_s2 = smov 127  }
 0x4d4   :  { %v356_v35 = vmul.f32 %v843_v10, %v355_v34  ;;  %v605_v55 = vsel %vm602_vm11, %v604_v53, %v600_v54  ;;  %v782_v10 = vceil.f32 %v1095_v1  ;;  %v783_v28 = vfloor.f32 %v1095_v1 }
 0x4d5   :  { %760 = vmatmul.msk.f32.vlgmr.msrb.gmra.mxu0 %vm73_vm14, %v341_v30  ;;  %v606_v56 = vmul.f32 %v605_v55, %v1075_v12  ;;  %vm781_vm12 = vcmp.lt.s32.totalorder %v1095_v1, 0  ;;  %v419_v30 = vlaneseq  ;;  %vm443_vm6 = vcmask 15368  }
 0x4d6   :  { %v784_v21 = vsel %vm781_vm12, %v782_v10, %v783_v28  ;;  %v453_v55 = vsel %vm443_vm6, %v1103_v11, 0.0  ;;  %vm654_vm7 = vcmask 7168   ;;  %vm686_vm10 = vcmask 15360  }
 0x4d7   :  { %768 = vmatpush.xpose.msk.msrb.mxu2 %vm40_vm0, %v606_v56  ;;  %v785_v13 = vcvt.f32.s32 %v784_v21  ;;  %v420_v34 = vand.u32 127, %v419_v30  ;;  %v454_v56 = vsel %vm443_vm6, %v1095_v1, 0.0 }
 0x4dd   :  { %761 = vmatmul.msk.f32.gmra.mxu0 %vm73_vm14, %v356_v35 }
 0x552   :  { %v381_v38 = vpop.f32.mrf.mxu0 }
 0x553   :  { %v382_v39 = vadd.f32 %v811_v37, %v381_v38 }
 0x555   :  { %v387_v40 = vsel %vm264_vm13, %v382_v39, -inf }
 0x556   :  { %388 = vmax.xlane.f32.xlu0 %v387_v40  ;;  %v917_v40 = vmov 0.0  }
 0x55a   :  { %v384_v41 = vpop.f32.mrf.mxu0 }
 0x55b   :  { %v385_v42 = vadd.f32 %v811_v37, %v384_v41 }
 0x55d   :  { %v390_v43 = vsel %vm264_vm13, %v385_v42, -inf }
 0x55e   :  { %391 = vmax.xlane.f32.xlu2 %v390_v43 }
 0x5c9   :  { %v389_v58 = vpop.xlane.xlu0 %388 }
 0x5ca   :  { %v393_v59 = vsub.f32 %v382_v39, %v389_v58 }
 0x5cc   :  { %v395_v60 = vmul.f32 1.442695, %v393_v59 }
 0x5ce   :  { %850 = vpow2.f32 %v395_v60  ;;  %v455_v60 = vadd.f32 %v454_v56, %v453_v55 }
 0x5d1   :  { %v392_v61 = vpop.xlane.xlu2 %391 }
 0x5d2   :  { %v394_v0 = vsub.f32 %v385_v42, %v392_v61 }
 0x5d4   :  { %v851_v5 = vpop.eup %850  ;;  %v397_v6 = vmul.f32 1.442695, %v394_v0 }
 0x5d5   :  { %v399_v7 = vsel %vm264_vm13, %v851_v5, 0.0  ;;  %v456_v5 = vrot.slane %v455_v60, 4 }
 0x5d6   :  { %852 = vpow2.f32 %v397_v6  ;;  %400 = vadd.xlane.f32.xlu2 %v399_v7 }
 0x5d7   :  { %854 = vrcp.f32 %v575_v19  ;;  %v457_v6 = vadd.f32 %v456_v5, %v455_v60 }
 0x5d9   :  { %v458_v7 = vrot.slane %v457_v6, 2 }
 0x5dc   :  { %v853_v8 = vpop.eup %852 }
 0x5dd   :  { %v402_v9 = vsel %vm264_vm13, %v853_v8, 0.0  ;;  %v855_v20 = vpop.eup %854  ;;  %v459_v8 = vadd.f32 %v458_v7, %v457_v6 }
 0x5de   :  { %403 = vadd.xlane.f32.xlu1 %v402_v9  ;;  %v578_v22 = vmul.f32 %v855_v20, %v575_v19  ;;  %vm583_vm2 = vweird.f32 %v855_v20 }
 0x5df   :  { %vm584_vm3 = vmor %vm582_vm1, %vm583_vm2  ;;  %v460_v9 = vrot.slane %v459_v8, 1 }
 0x5e0   :  { %v579_v23 = vsub.f32 1.0, %v578_v22 }
 0x5e1   :  { %v461_v10 = vadd.f32 %v460_v9, %v459_v8 }
 0x5e2   :  { %v580_v4 = vmul.f32 %v855_v20, %v579_v23 }
 0x5e3   :  { %v471_v2 = vand.u32 2147483647, %v461_v10 }
 0x5e4   :  { %v581_v63 = vadd.f32 %v855_v20, %v580_v4  ;;  %v473_v4 = vand.u32 2147483648, %v461_v10 }
 0x5e5   :  { %vm472_vm9 = vcmp.eq.f32.partialorder %v471_v2, 8.507059e+37 }
 0x5e6   :  { %v585_v25 = vsel %vm584_vm3, %v855_v20, %v581_v63 }
 0x5e7   :  { %v590_v26 = vsel %vm587_vm4, %v589_v24, %v585_v25 }
 0x5e8   :  { %v591_v27 = vmul.f32 %v590_v26, %v1000_v3 }
 0x5ea   :  { %769 = vmatpush.xpose.msk.msrb.mxu2 %vm40_vm0, %v591_v27 }
 0x5ed   :  { %770 = vmatmul.msk.f32.vlgmr.msrb.gmra.mxu2 %vm40_vm0, %v1000_v3 }
 0x5ee   :  { %425 = vperm.xlu2 %803, %v785_v13  }
 0x5f5   :  { %771 = vmatmul.msk.f32.gmra.mxu2 %vm40_vm0, %v1075_v12 }
 0x5f7   :  { %422 = vperm.xlu1 %802, %v780_v17  }
 0x649   :  { %v401_v29 = vpop.xlane.xlu2 %400 }
 0x64a   :  { %856 = vlog2.f32 %v401_v29 }
 0x650   :  { %v857_v31 = vpop.eup %856 }
 0x651   :  { %v406_v32 = vmul.f32 0.6931472, %v857_v31  ;;  %v404_v33 = vpop.xlane.xlu1 %403  ;;  %v426_v35 = vpop.permute.xlu2 %425 }
 0x652   :  { %858 = vlog2.f32 %v404_v33  ;;  %vm428_vm5 = vcmp.eq.s32.totalorder %v420_v34, %v426_v35 }
 0x653   :  { %v409_v36 = vsub.f32 %v393_v59, %v406_v32  ;;  %v763_v41 = vsel %vm428_vm5, 1.0, %v917_v40 }
 0x655   :  { %v411_v38 = vmul.f32 1.442695, %v409_v36 }
 0x657   :  { %860 = vpow2.f32 %v411_v38 }
 0x658   :  { %v859_v37 = vpop.eup %858 }
 0x659   :  { %v408_v39 = vmul.f32 0.6931472, %v859_v37 }
 0x65b   :  { %v410_v3 = vsub.f32 %v394_v0, %v408_v39 }
 0x65d   :  { %v413_v42 = vmul.f32 1.442695, %v410_v3  ;;  %v434_v12 = vmul.f32 %v763_v41, %v410_v3  ;;  %v861_v44 = vpop.eup %860 }
 0x65e   :  { %v644_v46 = vsub.f32 1.0, %v861_v44 }
 0x65f   :  { %862 = vpow2.f32 %v413_v42  ;;  %v438_v43 = vsel %vm264_vm13, %v434_v12, 0.0 }
 0x660   :  { %439 = vadd.xlane.f32.xlu2 %v438_v43  ;;  %864 = vrcp.f32 %v461_v10 }
 0x665   :  { %v863_v45 = vpop.eup %862 }
 0x666   :  { %v645_v47 = vsub.f32 1.0, %v863_v45  ;;  %v865_v28 = vpop.eup %864 }
 0x667   :  { %v463_v13 = vmul.f32 %v865_v28, %v461_v10 }
 0x668   :  { %v797_v48 = vpack.i.bf16 %v644_v46, %v645_v47 }
 0x669   :  { %v423_v49 = vpop.permute.xlu1 %422  ;;  %v464_v16 = vsub.f32 1.0, %v463_v13 }
 0x66a   :  { %798 = vrot.lane.b32.xlu0 %v797_v48, %s918_s2  ;;  %vm427_vm0 = vcmp.eq.s32.totalorder %v420_v34, %v423_v49 }
 0x66b   :  { %v762_v50 = vsel %vm427_vm0, 1.0, %v917_v40  ;;  %v465_v22 = vmul.f32 %v865_v28, %v464_v16 }
 0x66c   :  { %v433_v51 = vmul.f32 %v762_v50, %v409_v36 }
 0x66d   :  { %v466_v63 = vadd.f32 %v865_v28, %v465_v22 }
 0x66e   :  { %v435_v52 = vsel %vm264_vm13, %v433_v51, 0.0  ;;  %vm468_vm13 = vweird.f32 %v865_v28 }
 0x670   :  { %v636_v53 = vpop.f32.mrf.mxu2 }
 0x671   :  { %642 = vst.msk [vmem:[#allocation2] sm:$0xff] %vm73_vm14, %v636_v53 }
 0x678   :  { %v639_v54 = vpop.f32.mrf.mxu2 }
 0x679   :  { %643 = vst.msk [vmem:[#allocation2 + $0x8] sm:$0xff] %vm73_vm14, %v639_v54 }
 0x67a   :  { %725 = dma.vmem_to_hbm [thread:$0]  %s718_s20, 256, %s720_s22, [#allocation3], %s920_s23, %s920_s23, %s921_s24  }
 0x694   :  { %436 = vadd.xlane.f32.xlu0 %v435_v52 }
 0x6d3   :  { %v440_v21 = vpop.xlane.xlu2 %439 }
 0x6d4   :  { %v442_v14 = vmul.f32 %v440_v21, %v1095_v1  ;;  %v474_v1 = vor.u32 1.1754944e-38, %v473_v4 }
 0x6d6   :  { %v445_v18 = vsel %vm443_vm6, %v442_v14, 0.0 }
 0x6dc   :  { %v799_v57 = vpop.permute.xlu0 %798 }
 0x6dd   :  { %v801_v58 = vunpack.i.h.bf16 %v799_v57  ;;  %v800_v59 = vunpack.i.l.bf16 %v799_v57 }
 0x6df   :  { %v656_v61 = vsel %vm654_vm7, %v800_v59, %v863_v45  ;;  %v655_v0 = vsel %vm654_vm7, %v801_v58, %v861_v44 }
 0x6e0   :  { %677 = vmatpush.msrb.mxu3 %v656_v61 }
 0x6e2   :  { %678 = vmatpush.msrb.mxu3 %v655_v0 }
 0x6e3   :  { %772 = vmatmul.msk.f32.vlgmr.msrb.gmra.mxu3 %vm73_vm14, %v636_v53 }
 0x6eb   :  { %773 = vmatmul.msk.f32.gmra.mxu3 %vm73_vm14, %v639_v54  ;;  %vm467_vm14 = vweird.f32 %v461_v10 }
 0x6ec   :  { %vm469_vm8 = vmor %vm467_vm14, %vm468_vm13 }
 0x6ed   :  { %v470_v26 = vsel %vm469_vm8, %v865_v28, %v466_v63 }
 0x6ee   :  { %v475_v27 = vsel %vm472_vm9, %v474_v1, %v470_v26 }
 0x707   :  { %v437_v15 = vpop.xlane.xlu0 %436 }
 0x708   :  { %v441_v17 = vmul.f32 %v437_v15, %v1103_v11 }
 0x70a   :  { %v444_v19 = vsel %vm443_vm6, %v441_v17, 0.0 }
 0x70b   :  { %v446_v20 = vadd.f32 %v445_v18, %v444_v19 }
 0x70d   :  { %v447_v23 = vrot.slane %v446_v20, 4 }
 0x70f   :  { %v448_v62 = vadd.f32 %v447_v23, %v446_v20 }
 0x711   :  { %v449_v24 = vrot.slane %v448_v62, 2 }
 0x713   :  { %v450_v25 = vadd.f32 %v449_v24, %v448_v62 }
 0x715   :  { %v451_v11 = vrot.slane %v450_v25, 1 }
 0x717   :  { %v452_v29 = vadd.f32 %v451_v11, %v450_v25 }
 0x719   :  { %v476_v30 = vmul.f32 %v475_v27, %v452_v29 }
 0x71b   :  { %v477_v31 = vsub.f32 0.0, %v476_v30 }
 0x71d   :  { %479 = vrot.lane.b32.xlu2 %v477_v31, %s918_s2 }
 0x766   :  { %v680_v32 = vpop.f32.mrf.mxu3 }
 0x767   :  { %v687_v33 = vsel %vm686_vm10, %v680_v32, -inf }
 0x768   :  { %688 = vmax.xlane.f32.xlu1 %v687_v33 }
 0x76e   :  { %v683_v34 = vpop.f32.mrf.mxu3 }
 0x76f   :  { %v690_v35 = vsel %vm686_vm10, %v683_v34, -inf }
 0x770   :  { %691 = vmax.xlane.f32.xlu0 %v690_v35 }
 0x777   :  { %v480_v36 = vpop.permute.xlu2 %479 }
 0x778   :  { %786 = vpush %v480_v36 }
 0x7a9   :  { %s787_s18 = spop %786 }
 0x7aa   :  { %484 = sst [smem:[#allocation5]] %s787_s18 }
 0x7ab   :  { %734 = dma.smem_to_hbm %s922_s28, 16, %s732_s27, [#allocation4]  }
 0x7db   :  { %v689_v37 = vpop.xlane.xlu1 %688 }
 0x7dc   :  { %v693_v38 = vsub.f32 %v680_v32, %v689_v37 }
 0x7de   :  { %v695_v39 = vmul.f32 1.442695, %v693_v38 }
 0x7e0   :  { %866 = vpow2.f32 %v695_v39 }
 0x7e3   :  { %v692_v40 = vpop.xlane.xlu0 %691 }
 0x7e4   :  { %v694_v41 = vsub.f32 %v683_v34, %v692_v40 }
 0x7e6   :  { %v867_v3 = vpop.eup %866  ;;  %v697_v42 = vmul.f32 1.442695, %v694_v41 }
 0x7e7   :  { %v699_v12 = vsel %vm686_vm10, %v867_v3, 0.0 }
 0x7e8   :  { %868 = vpow2.f32 %v697_v42  ;;  %700 = vadd.xlane.f32.xlu1 %v699_v12 }
 0x7ee   :  { %v869_v43 = vpop.eup %868 }
 0x7ef   :  { %v702_v44 = vsel %vm686_vm10, %v869_v43, 0.0 }
 0x7f0   :  { %703 = vadd.xlane.f32.xlu0 %v702_v44 }
 0x85b   :  { %v701_v45 = vpop.xlane.xlu1 %700 }
 0x85c   :  { %870 = vrcp.f32 %v701_v45 }
 0x862   :  { %v871_v46 = vpop.eup %870 }
 0x863   :  { %v707_v47 = vmul.f32 %v871_v46, %v867_v3  ;;  %v704_v48 = vpop.xlane.xlu0 %703 }
 0x864   :  { %872 = vrcp.f32 %v704_v48 }
 0x865   :  { %709 = vst.msk [vmem:[%s1154_s6] sm:$0xff] %vm686_vm10, %v707_v47 }
 0x86a   :  { %v873_v49 = vpop.eup %872 }
 0x86b   :  { %v708_v50 = vmul.f32 %v873_v49, %v869_v43 }
 0x86d   :  { %710 = vst.msk [vmem:[%s1154_s6 + $0x8] sm:$0xff] %vm686_vm10, %v708_v50 }
 0x86e   :  { %910 = dma.done.wait [#allocation3], 256  }
 0x86f   :  { %911 = vsyncadd [#allocation3], 4294967040 }
 0x870   :  { %912 = dma.done.wait [#allocation4], 16  }
 0x871   :  { %913 = vsyncadd [#allocation4], 4294967280 }
 0x872   :  { %745 = sfence }
 0x873   :  { %746 = vsyncpa [#allocation3], 1 }
 0x874   :  { %747 = vsyncpa [#allocation4], 1 }

</bundles_post_ra>
